<compile_context>
chip_gen: v7x
topology: tpu7x:2x2x1
jax: 0.10.0
libtpu: 0.0.40
codegen_flags: <defaults>
</compile_context>

<pallas_src>
import jax
import jax.numpy as jnp
from jax import lax
from jax.experimental import pallas as pl
from jax.experimental.pallas import tpu as pltpu


_NEG = -1e30  # bias of padded class rows: exp(_NEG - m) underflows to exactly 0


def _mlp_log_softmax_kernel(x_ref, w1_ref, b1_ref, w2_ref, b2_ref, o_ref):
    x = x_ref[...]                                       # [tb, F]
    # lin1:  h_T = W1_pad @ x^T  -> [H8, tb]
    h = lax.dot_general(
        w1_ref[...], x,
        dimension_numbers=(((1,), (1,)), ((), ())),
        preferred_element_type=jnp.float32)
    h = jax.nn.sigmoid(h + b1_ref[...])                  # [H8, tb]; exp on EUP
    # lin2:  logits_T = W2_pad @ h_T -> [C8, tb]   (canonical [M,K] x [K,N])
    logits = lax.dot_general(
        w2_ref[...], h,
        dimension_numbers=(((1,), (0,)), ((), ())),
        preferred_element_type=jnp.float32)
    logits = logits + b2_ref[...]                        # padded classes -> -1e30
    # Numerically stable log_softmax over classes (axis 0 = sublanes).
    m = jnp.max(logits, axis=0, keepdims=True)           # [1, tb]
    shifted = logits - m
    lse = jnp.log(jnp.sum(jnp.exp(shifted), axis=0, keepdims=True))
    o_ref[...] = shifted - lse                           # compact [C8, tb] store


def _round_up(n, m):
    return ((n + m - 1) // m) * m


def multiclass_net_forward(x, w1, b1, w2, b2, *,
                           batch_tile=4096, min_parallel_steps=2):
    """x: [B, F]; w1: [H, F]; b1: [H]; w2: [C, H]; b2: [C]  (PyTorch conventions).

    All inputs float32.  Returns log-probs of shape [B, C].
    """
    B, F = x.shape
    H, F2 = w1.shape
    C, H2 = w2.shape
    assert F == F2 and H == H2, "weight shapes inconsistent with input"

    H8 = _round_up(H, 8)   # hidden dim on sublanes
    C8 = _round_up(C, 8)   # class dim on sublanes (output sublane width)

    # One-time tiny weight/bias prep (no per-call copies of x, no in-kernel
    # transposes of resident data).
    w1_p = jnp.pad(w1, ((0, H8 - H), (0, 0)))                       # [H8, F]
    b1_c = jnp.pad(b1.reshape(H, 1), ((0, H8 - H), (0, 0)))          # [H8, 1]
    w2_p = jnp.pad(w2, ((0, C8 - C), (0, H8 - H)))                   # [C8, H8]
    b2_c = jnp.pad(b2.reshape(C, 1), ((0, C8 - C), (0, 0)),
                   constant_values=_NEG)                             # [C8, 1]

    # Batch tiling: the tile is the LANE dim of the output, so it must be a
    # multiple of 128 whenever the grid has more than one step.  Small batches
    # use a single step with block dims == array dims (no 128 constraint).
    tb_cap = max(128, _round_up(int(batch_tile), 128))
    if B <= 256:
        tb = B
    else:
        # Keep >= min_parallel_steps grid steps so v7x's two TensorCores both
        # get work, but never exceed the cap (VMEM / pipeline depth).
        tb = min(tb_cap, _round_up(pl.cdiv(B, min_parallel_steps), 128))
    grid = (pl.cdiv(B, tb),)   # last block may be partial; rows are independent

    # VMEM budget: double-buffered x/out tiles + resident weights + the
    # [H8, tb] activation, with 2x headroom; clamped to fit v7x's 64 MiB.
    per_step = 4 * (2 * tb * (F + C8)
                    + H8 * (F + 1) + C8 * (H8 + 1)
                    + 6 * H8 * tb)
    vmem_limit = int(min(max(2 * per_step, 16 * 2**20), 48 * 2**20))

    flops = 2 * B * (F * H8 + H8 * C8)
    transcendentals = B * (H8 + 2 * C8)                 # sigmoid + softmax exp/log
    bytes_accessed = 4 * (B * F + C8 * B
                          + H8 * F + H8 + C8 * H8 + C8)

    out = pl.pallas_call(
        _mlp_log_softmax_kernel,
        out_shape=jax.ShapeDtypeStruct((C8, B), jnp.float32),
        grid=grid,
        in_specs=[
            pl.BlockSpec((tb, F), lambda i: (i, 0)),     # x: batch-tiled
            pl.BlockSpec((H8, F), lambda i: (0, 0)),     # w1 (padded): resident
            pl.BlockSpec((H8, 1), lambda i: (0, 0)),     # b1 column: resident
            pl.BlockSpec((C8, H8), lambda i: (0, 0)),    # w2 (padded): resident
            pl.BlockSpec((C8, 1), lambda i: (0, 0)),     # b2 column: resident
        ],
        out_specs=pl.BlockSpec((C8, tb), lambda i: (0, i)),  # compact writeback
        compiler_params=pltpu.CompilerParams(
            dimension_semantics=("parallel",),           # v7x: shard batch over TCs
            vmem_limit_bytes=vmem_limit,
        ),
        cost_estimate=pl.CostEstimate(
            flops=flops,
            transcendentals=transcendentals,
            bytes_accessed=bytes_accessed),
    )(x, w1_p, b1_c, w2_p, b2_c)

    # Drop padded class rows and return batch-major [B, C] (tiny transpose).
    return out[:C, :B].T


def _reference_forward(x, w1, b1, w2, b2):
    h = jax.nn.sigmoid(x @ w1.T + b1)
    logits = h @ w2.T + b2
    return jax.nn.log_softmax(logits, axis=1)


if __name__ == "__main__":
    NUM_FEATURES = 32
    HIDDEN_FEATURES = 16
    NUM_CLASSES = 4
    BATCH = 8

    key = jax.random.PRNGKey(0)
    kx, k1, k2, k3, k4 = jax.random.split(key, 5)

    x = jax.random.normal(kx, (BATCH, NUM_FEATURES), dtype=jnp.float32)
    # PyTorch Linear shapes: weight [out, in], bias [out].
    w1 = jax.random.normal(k1, (HIDDEN_FEATURES, NUM_FEATURES), dtype=jnp.float32) * 0.1
    b1 = jax.random.normal(k2, (HIDDEN_FEATURES,), dtype=jnp.float32) * 0.1
    w2 = jax.random.normal(k3, (NUM_CLASSES, HIDDEN_FEATURES), dtype=jnp.float32) * 0.1
    b2 = jax.random.normal(k4, (NUM_CLASSES,), dtype=jnp.float32) * 0.1

    # 1) Small batch, single grid step.
    out = jax.block_until_ready(multiclass_net_forward(x, w1, b1, w2, b2))
    ref = _reference_forward(x, w1, b1, w2, b2)
    assert out.shape == (BATCH, NUM_CLASSES)
    assert jnp.allclose(out, ref, atol=2e-5, rtol=2e-5), "mismatch vs reference (B=8)"

    # 2) Batch that is not a multiple of 8 (single step, block == full dims).
    B2 = 20
    x2 = jax.random.normal(jax.random.PRNGKey(1), (B2, NUM_FEATURES), dtype=jnp.float32)
    out2 = jax.block_until_ready(multiclass_net_forward(x2, w1, b1, w2, b2))
    ref2 = _reference_forward(x2, w1, b1, w2, b2)
    assert out2.shape == (B2, NUM_CLASSES)
    assert jnp.allclose(out2, ref2, atol=2e-5, rtol=2e-5), "mismatch vs reference (B=20)"

    # 3) Multi-step grid with a partial final block (640 = 256 + 256 + 128).
    B3 = 640
    x3 = jax.random.normal(jax.random.PRNGKey(2), (B3, NUM_FEATURES), dtype=jnp.float32)
    out3 = jax.block_until_ready(
        multiclass_net_forward(x3, w1, b1, w2, b2, batch_tile=256))
    ref3 = _reference_forward(x3, w1, b1, w2, b2)
    assert out3.shape == (B3, NUM_CLASSES)
    assert jnp.allclose(out3, ref3, atol=2e-5, rtol=2e-5), "mismatch vs reference (B=640)"

    print("KERNEL_OK")
</pallas_src>

<mosaic_0001>
module attributes {stable_mosaic.version = 11 : i64} {
  func.func @_mlp_log_softmax_kernel(%arg0: i32, %arg1: memref<8x32xf32, #tpu.memory_space<vmem>>, %arg2: memref<16x32xf32, #tpu.memory_space<vmem>>, %arg3: memref<16x1xf32, #tpu.memory_space<vmem>>, %arg4: memref<8x16xf32, #tpu.memory_space<vmem>>, %arg5: memref<8x1xf32, #tpu.memory_space<vmem>>, %arg6: memref<8x8xf32, #tpu.memory_space<vmem>>) attributes {dimension_semantics = [#tpu.dimension_semantics<parallel>], iteration_bounds = array<i64: 1>, scalar_prefetch = 0 : i64, scratch_operands = 0 : i64, tpu.core_type = #tpu.core_type<tc>, window_params = [{transform_indices = @transform_0, window_bounds = array<i64: 8, 32>}, {pipeline_mode = #tpu.pipeline_mode<synchronous>, transform_indices = @transform_1, window_bounds = array<i64: 16, 32>}, {pipeline_mode = #tpu.pipeline_mode<synchronous>, transform_indices = @transform_2, window_bounds = array<i64: 16, 1>}, {pipeline_mode = #tpu.pipeline_mode<synchronous>, transform_indices = @transform_3, window_bounds = array<i64: 8, 16>}, {pipeline_mode = #tpu.pipeline_mode<synchronous>, transform_indices = @transform_4, window_bounds = array<i64: 8, 1>}, {transform_indices = @transform_5, window_bounds = array<i64: 8, 8>}]} {
    %c0 = arith.constant 0 : index
    %c0_0 = arith.constant 0 : index
    %0 = vector.load %arg1[%c0, %c0_0] : memref<8x32xf32, #tpu.memory_space<vmem>>, vector<8x32xf32>
    %c0_1 = arith.constant 0 : index
    %c0_2 = arith.constant 0 : index
    %1 = vector.load %arg2[%c0_1, %c0_2] : memref<16x32xf32, #tpu.memory_space<vmem>>, vector<16x32xf32>
    %cst = arith.constant dense<0.000000e+00> : vector<16x8xf32>
    %2 = tpu.matmul %1, %0, %cst {dimension_numbers = #tpu.dot_dimension_numbers<[1], [1], [0], [0], [0, 0, 1, 0], [], []>} : vector<16x32xf32>, vector<8x32xf32>, vector<16x8xf32> -> vector<16x8xf32>
    %c0_3 = arith.constant 0 : index
    %c0_4 = arith.constant 0 : index
    %3 = vector.load %arg3[%c0_3, %c0_4] : memref<16x1xf32, #tpu.memory_space<vmem>>, vector<16x1xf32>
    %4 = vector.broadcast %3 : vector<16x1xf32> to vector<16x8xf32>
    %5 = arith.addf %2, %4 : vector<16x8xf32>
    %6 = arith.negf %5 : vector<16x8xf32>
    %7 = math.exp %6 : vector<16x8xf32>
    %cst_5 = arith.constant 1.000000e+00 : f32
    %8 = vector.broadcast %cst_5 : f32 to vector<16x8xf32>
    %9 = arith.addf %8, %7 : vector<16x8xf32>
    %10 = arith.divf %8, %9 : vector<16x8xf32>
    %c0_6 = arith.constant 0 : index
    %c0_7 = arith.constant 0 : index
    %11 = vector.load %arg4[%c0_6, %c0_7] : memref<8x16xf32, #tpu.memory_space<vmem>>, vector<8x16xf32>
    %cst_8 = arith.constant dense<0.000000e+00> : vector<8x8xf32>
    %12 = tpu.matmul %11, %10, %cst_8 {dimension_numbers = #tpu.dot_dimension_numbers<[1], [0], [0], [1], [0, 0, 1, 1], [], []>} : vector<8x16xf32>, vector<16x8xf32>, vector<8x8xf32> -> vector<8x8xf32>
    %c0_9 = arith.constant 0 : index
    %c0_10 = arith.constant 0 : index
    %13 = vector.load %arg5[%c0_9, %c0_10] : memref<8x1xf32, #tpu.memory_space<vmem>>, vector<8x1xf32>
    %14 = vector.broadcast %13 : vector<8x1xf32> to vector<8x8xf32>
    %15 = arith.addf %12, %14 : vector<8x8xf32>
    %cst_11 = arith.constant dense<0xFF800000> : vector<8xf32>
    %16 = vector.multi_reduction <maximumf>, %15, %cst_11 [0] : vector<8x8xf32> to vector<8xf32>
    %17 = vector.shape_cast %16 : vector<8xf32> to vector<1x8xf32>
    %18 = vector.broadcast %17 : vector<1x8xf32> to vector<8x8xf32>
    %19 = arith.subf %15, %18 : vector<8x8xf32>
    %20 = math.exp %19 : vector<8x8xf32>
    %cst_12 = arith.constant dense<0.000000e+00> : vector<8xf32>
    %21 = vector.multi_reduction <add>, %20, %cst_12 [0] : vector<8x8xf32> to vector<8xf32>
    %22 = vector.shape_cast %21 : vector<8xf32> to vector<1x8xf32>
    %23 = math.log %22 : vector<1x8xf32>
    %24 = vector.broadcast %23 : vector<1x8xf32> to vector<8x8xf32>
    %25 = arith.subf %19, %24 : vector<8x8xf32>
    %c0_13 = arith.constant 0 : index
    %c0_14 = arith.constant 0 : index
    %26 = vector.load %arg6[%c0_13, %c0_14] : memref<8x8xf32, #tpu.memory_space<vmem>>, vector<8x8xf32>
    tpu.vector_store %arg6[%c0_13, %c0_14], %25 {strides = array<i32>} : memref<8x8xf32, #tpu.memory_space<vmem>>, vector<8x8xf32>,
    return
  }
  func.func @transform_0(%arg0: i32) -> (i32, i32) {
    %c0_i32 = arith.constant 0 : i32
    %c0_i32_0 = arith.constant 0 : i32
    return %arg0, %c0_i32 : i32, i32
  }
  func.func @transform_1(%arg0: i32) -> (i32, i32) {
    %c0_i32 = arith.constant 0 : i32
    %c0_i32_0 = arith.constant 0 : i32
    %c0_i32_1 = arith.constant 0 : i32
    return %c0_i32, %c0_i32_0 : i32, i32
  }
  func.func @transform_2(%arg0: i32) -> (i32, i32) {
    %c0_i32 = arith.constant 0 : i32
    %c0_i32_0 = arith.constant 0 : i32
    %c0_i32_1 = arith.constant 0 : i32
    return %c0_i32, %c0_i32_0 : i32, i32
  }
  func.func @transform_3(%arg0: i32) -> (i32, i32) {
    %c0_i32 = arith.constant 0 : i32
    %c0_i32_0 = arith.constant 0 : i32
    %c0_i32_1 = arith.constant 0 : i32
    return %c0_i32, %c0_i32_0 : i32, i32
  }
  func.func @transform_4(%arg0: i32) -> (i32, i32) {
    %c0_i32 = arith.constant 0 : i32
    %c0_i32_0 = arith.constant 0 : i32
    %c0_i32_1 = arith.constant 0 : i32
    return %c0_i32, %c0_i32_0 : i32, i32
  }
  func.func @transform_5(%arg0: i32) -> (i32, i32) {
    %c0_i32 = arith.constant 0 : i32
    %c0_i32_0 = arith.constant 0 : i32
    return %c0_i32, %arg0 : i32, i32
  }
}

</mosaic_0001>

<bundles_post_ra>
// kernel: tpu_custom_call.1
= control target key start
LH: loop header
LB: loop body
LE: loop exit
PB: predicated region body
PF: predicated region fallthrough
CT: control target
= control target key end

     0   :  { %vm36_vm0 = vcmask 261120   ;;  %s391_s0 = inlined_call_operand.vmem [shape: f32[8,32], index: 0, kind: input, shape index: {}]   ;;  %s392_s1 = inlined_call_operand.vmem [shape: f32[16,32], index: 1, kind: input, shape index: {}]   ;;  %s393_s2 = inlined_call_operand.vmem [shape: f32[16,1], index: 2, kind: input, shape index: {}]   ;;  %s394_s3 = inlined_call_operand.vmem [shape: f32[8,16], index: 3, kind: input, shape index: {}]   ;;  %s395_s4 = inlined_call_operand.vmem [shape: f32[8,1], index: 4, kind: input, shape index: {}]   ;;  %s396_s5 = inlined_call_operand.hbm [shape: f32[8,8], index: 5, kind: output, shape index: {}]  }
   0x1   :  { %v21_v0 = vld [vmem:[%s391_s0] sm:$0xff] }
   0x2   :  { %v22_v1 = vld [vmem:[%s392_s1] sm:$0xff]  ;;  %262 = vmatprep.subr.msk.mxu0 %vm36_vm0, %v21_v0 }
   0x3   :  { %264 = vmatprep.mubr.msk.f32.mxu0 %vm36_vm0, %v22_v1  ;;  %v24_v2 = vld [vmem:[%s393_s2] sm:$0xff] }
   0x4   :  { %10 = vsyncpa [#allocation3], 0  ;;  %263 = vmatpush3.xpose.msk.msra.mxu0 %vm36_vm0, %v21_v0  ;;  %v23_v3 = vld [vmem:[%s392_s1 + $0x8] sm:$0xff]  ;;  %v320_v4 = vmov 0   ;;  %v321_v6 = vmov 0.0|0.0   ;;  %vm322_vm1 = vmmov 0  }
   0x5   :  { %282 = vset.pattern.permute.xlu0 %v320_v4  ;;  %283 = vset.pattern.permute.xlu1 %v320_v4  ;;  %v25_v5 = vld [vmem:[%s393_s2 + $0x8] sm:$0xff]  ;;  %v323_v7 = vmov 0.0   ;;  %v134_v8 = vld [vmem:[%s395_s4] sm:$0xff]  ;;  %vm140_vm2 = vcmask 130048   ;;  %vm214_vm3 = vcmask 64512  }
   0x6   :  { %28 = vperm.xlu0 %282, %v24_v2   ;;  %274 = vmatprep.subr.bf16.mxu1 %v321_v6  ;;  %v133_v24 = vld [vmem:[%s394_s3] sm:$0xff]  ;;  %s324_s3 = smov [#allocation2]  }
   0x7   :  { %265 = vmatmul.mubr.msk.f32.vlgmr.msra.gmra.mrb[0].mxu0 %vm36_vm0, %v23_v3  ;;  %271 = vmatprep.mubr.msk.f32.mxu1 %vm322_vm1, %v323_v7  ;;  %s242_s4 = sshll.u32 %s324_s3, 4  ;;  %s243_s4 = int_to_ptr.vmem [resolvable:$true] %s242_s4 }
   0x8   :  { %137 = vperm.xlu1 %283, %v134_v8   ;;  %s296_s29 = scalar_lea.vmem %s243_s4, 128  ;;  %p301_p1 = scmp.lt.s32.totalorder %s243_s4, %s243_s4 }
   0x9   :  { %p297_p0 = scmp.ne.s32.totalorder %s243_s4, %s296_s29  ;;  %p302_p2 = scmp.lt.s32.totalorder %s296_s29, %s296_s29 }
   0xa   :  { %33 = vperm.xlu0 %282, %v25_v5  }
   0xb   :  { %p303_p3 = por %p302_p2, %p301_p1 }
   0xd   :  { %p304_p4 = pnand %p303_p3, %p297_p0 }
  0x85   :  { %v29_v9 = vpop.permute.xlu0 %28 }
  0x87   :  { %v138_v25 = vpop.permute.xlu1 %137 }
  0x89   :  { %v34_v10 = vpop.permute.xlu0 %33 }
  0xda   :  { %v266_v11 = vpop.f32.mrb[0].mxu0 }
  0xdb   :  { %v118_v12 = vadd.f32 %v266_v11, %v34_v10  ;;  %v112_v13 = vpop.f32.mrb[1].mxu0 }
  0xdc   :  { %v113_v14 = vadd.f32 %v112_v13, %v29_v9 }
  0xdd   :  { %v254_v15 = vmul.f32 -1.442695, %v118_v12 }
  0xde   :  { %v253_v16 = vmul.f32 -1.442695, %v113_v14 }
  0xdf   :  { %284 = vpow2.f32 %v254_v15 }
  0xe0   :  { %286 = vpow2.f32 %v253_v16 }
  0xe9   :  { %v285_v17 = vpop.eup %284 }
  0xea   :  { %v287_v18 = vpop.eup %286  ;;  %v128_v19 = vadd.f32 1.0, %v285_v17 }
  0xeb   :  { %v127_v20 = vadd.f32 1.0, %v287_v18 }
  0xec   :  { %288 = vrcp.f32 %v128_v19 }
  0xed   :  { %290 = vrcp.f32 %v127_v20 }
  0xf6   :  { %v289_v21 = vpop.eup %288 }
  0xf7   :  { %v291_v22 = vpop.eup %290 }
  0xf8   :  { %v275_v23 = vpack.c.bf16 %v289_v21, %v291_v22 }
  0xfa   :  { %276 = vmatpush3.bf16.msra.mxu1 %v275_v23 }
  0xfd   :  { %272 = vmatmul.mubr.msk.f32.vlgmr.msra.gmra.mrb[0].mxu1 %vm140_vm2, %v133_v24 }
 0x1d0   :  { %v210_v26 = vpop.f32.mrb[0].mxu1 }
 0x1d1   :  { %v211_v27 = vadd.f32 %v210_v26, %v138_v25  ;;  %v273_v28 = vpop.f32.mrb[1].mxu1 }
 0x1d3   :  { %v215_v29 = vsel %vm214_vm3, %v211_v27, -inf }
 0x1d4   :  { %v216_v30 = vrot.slane %v215_v29, 4 }
 0x1d6   :  { %v217_v31 = vmax.f32 %v215_v29, %v216_v30 }
 0x1d8   :  { %v218_v32 = vrot.slane %v217_v31, 2 }
 0x1da   :  { %v219_v33 = vmax.f32 %v217_v31, %v218_v32 }
 0x1dc   :  { %v220_v34 = vrot.slane %v219_v33, 1 }
 0x1de   :  { %v221_v35 = vmax.f32 %v219_v33, %v220_v34 }
 0x1e0   :  { %v222_v36 = vsub.f32 %v211_v27, %v221_v35 }
 0x1e2   :  { %v223_v37 = vmul.f32 1.442695, %v222_v36 }
 0x1e4   :  { %292 = vpow2.f32 %v223_v37 }
 0x1ee   :  { %v293_v38 = vpop.eup %292 }
 0x1ef   :  { %v225_v39 = vsel %vm214_vm3, %v293_v38, 0.0 }
 0x1f0   :  { %v226_v40 = vrot.slane %v225_v39, 4 }
 0x1f2   :  { %v227_v41 = vadd.f32 %v226_v40, %v225_v39 }
 0x1f4   :  { %v228_v42 = vrot.slane %v227_v41, 2 }
 0x1f6   :  { %v229_v43 = vadd.f32 %v228_v42, %v227_v41 }
 0x1f8   :  { %v230_v44 = vrot.slane %v229_v43, 1 }
 0x1fa   :  { %v231_v45 = vadd.f32 %v230_v44, %v229_v43 }
 0x1fc   :  { %294 = vlog2.f32 %v231_v45 }
 0x206   :  { %v295_v46 = vpop.eup %294 }
 0x207   :  { %v233_v47 = vmul.f32 0.6931472, %v295_v46 }
 0x209   :  { %v234_v48 = vsub.f32 %v222_v36, %v233_v47 }
 0x20b   :  { %235 = vst.msk [vmem:[#allocation2] sm:$0xff] %vm214_vm3, %v234_v48 }
 0x20c   :  { %307 = shalt.err (!%p304_p4)
}
 0x20d   :  { %s308_s7 = scalar_lea.hbm %s396_s5, 128 }
 0x20e   :  { %p309_p5 = scmp.ne.s32.totalorder %s396_s5, %s308_s7  ;;  %p312_p6 = scmp.lt.u32.totalorder %s308_s7, %s396_s5 }
 0x210   :  { %p314_p7 = pnand %p312_p6, %p309_p5 }
 0x212   :  { %317 = shalt.err (!%p314_p7)
}
 0x213   :  { %245 = dma.vmem_to_hbm [thread:$0]  %s243_s4, 128, %s396_s5, [#allocation3]  }
 0x214   :  { %318 = dma.done.wait [#allocation3], 128  }
 0x215   :  { %319 = vsyncadd [#allocation3], 4294967168 }
 0x216   :  { %249 = vsyncpa [#allocation3], 1 }

</bundles_post_ra>
